<compile_context>
chip_gen: v5e
topology: v5e:2x2
jax: 0.10.0
libtpu: 0.0.40
codegen_flags: <defaults>
</compile_context>

<pallas_src>
import functools
import math

import jax
import jax.numpy as jnp
from jax.experimental import pallas as pl
from jax.experimental.pallas import tpu as pltpu

_LN_EPS = 1e-5  # PyTorch nn.LayerNorm default


def _pick_tile(dim, candidates):
    """Largest candidate tile dividing `dim` that still gives >= 2 grid steps."""
    for t in candidates:
        if dim % t == 0 and dim // t >= 2:
            return t
    return dim


# ---------------------------------------------------------------------------
# Kernel 1: fused Q/K/V projection (nn.Linear, bias=False):  q,k,v = x @ W*
# ---------------------------------------------------------------------------
def _qkv_kernel(x_ref, wq_ref, wk_ref, wv_ref, q_ref, k_ref, v_ref):
    x = x_ref[...]
    q_ref[...] = jnp.dot(x, wq_ref[...],
                         preferred_element_type=jnp.float32).astype(q_ref.dtype)
    k_ref[...] = jnp.dot(x, wk_ref[...],
                         preferred_element_type=jnp.float32).astype(k_ref.dtype)
    v_ref[...] = jnp.dot(x, wv_ref[...],
                         preferred_element_type=jnp.float32).astype(v_ref.dtype)


def qkv_projection(x2d, wq, wk, wv):
    M, E = x2d.shape
    tm = _pick_tile(M, (512, 256, 128, 64, 32, 16, 8))
    row_spec = pl.BlockSpec((tm, E), lambda i: (i, 0))
    w_spec = pl.BlockSpec((E, E), lambda i: (0, 0))
    out_sds = jax.ShapeDtypeStruct((M, E), x2d.dtype)
    return pl.pallas_call(
        _qkv_kernel,
        out_shape=(out_sds, out_sds, out_sds),
        grid_spec=pltpu.PrefetchScalarGridSpec(
            num_scalar_prefetch=0,
            grid=(M // tm,),
            in_specs=[row_spec, w_spec, w_spec, w_spec],
            out_specs=(row_spec, row_spec, row_spec),
        ),
        compiler_params=pltpu.CompilerParams(
            dimension_semantics=("parallel",)),
    )(x2d, wq, wk, wv)


# ---------------------------------------------------------------------------
# Kernel 2: per-(batch, head) scaled dot-product attention with padding mask.
# ---------------------------------------------------------------------------
def _mha_kernel(q_ref, k_ref, v_ref, mask_ref, ctx_ref, w_ref, *, scale):
    q = q_ref[...]                      # (S, hd)
    k = k_ref[...]                      # (S, hd)
    v = v_ref[...]                      # (S, hd)
    # scores = q @ k^T / sqrt(head_dim)
    s = jax.lax.dot_general(q, k, (((1,), (1,)), ((), ())),
                            preferred_element_type=jnp.float32) * scale
    # padding mask: True(=1) means the key position is ignored (-inf), same for
    # every query row / head (mask.unsqueeze(1).unsqueeze(2) in the reference).
    s = jnp.where(mask_ref[...] > 0, jnp.float32(-jnp.inf), s)
    m = jnp.max(s, axis=-1, keepdims=True)
    e = jnp.exp(s - m)
    p = e / jnp.sum(e, axis=-1, keepdims=True)
    # (attention dropout: identity in eval mode)
    ctx = jnp.dot(p.astype(v.dtype), v, preferred_element_type=jnp.float32)
    ctx_ref[...] = ctx.astype(ctx_ref.dtype)
    w_ref[...] = p.astype(w_ref.dtype)


def mha_core(qh, kh, vh, mask_i32, *, scale):
    B, nH, S, hd = qh.shape
    head_spec = pl.BlockSpec((None, None, S, hd), lambda b, h: (b, h, 0, 0))
    mask_spec = pl.BlockSpec((None, 1, S), lambda b, h: (b, 0, 0))
    w_spec = pl.BlockSpec((None, None, S, S), lambda b, h: (b, h, 0, 0))
    return pl.pallas_call(
        functools.partial(_mha_kernel, scale=scale),
        out_shape=(jax.ShapeDtypeStruct((B, nH, S, hd), qh.dtype),
                   jax.ShapeDtypeStruct((B, nH, S, S), jnp.float32)),
        grid_spec=pltpu.PrefetchScalarGridSpec(
            num_scalar_prefetch=0,
            grid=(B, nH),
            in_specs=[head_spec, head_spec, head_spec, mask_spec],
            out_specs=(head_spec, w_spec),
        ),
        compiler_params=pltpu.CompilerParams(
            dimension_semantics=("parallel", "parallel")),
    )(qh, kh, vh, mask_i32)


# ---------------------------------------------------------------------------
# Kernel 3: attention output projection + residual add + LayerNorm (fused).
# ---------------------------------------------------------------------------
def _outproj_add_ln_kernel(ctx_ref, wo_ref, res_ref, g_ref, b_ref, o_ref, *, eps):
    y = jnp.dot(ctx_ref[...], wo_ref[...], preferred_element_type=jnp.float32)
    # (dropout on the attention output: identity in eval mode)
    y = y + res_ref[...].astype(jnp.float32)
    mu = jnp.mean(y, axis=-1, keepdims=True)
    var = jnp.mean(jnp.square(y - mu), axis=-1, keepdims=True)
    yn = (y - mu) * jax.lax.rsqrt(var + eps)
    o_ref[...] = (yn * g_ref[...] + b_ref[...]).astype(o_ref.dtype)


def out_projection_add_ln(ctx2d, wo, res2d, gamma, beta, *, eps=_LN_EPS):
    M, E = ctx2d.shape
    tm = _pick_tile(M, (512, 256, 128, 64, 32, 16, 8))
    row_spec = pl.BlockSpec((tm, E), lambda i: (i, 0))
    vec_spec = pl.BlockSpec((1, E), lambda i: (0, 0))
    return pl.pallas_call(
        functools.partial(_outproj_add_ln_kernel, eps=eps),
        out_shape=jax.ShapeDtypeStruct((M, E), ctx2d.dtype),
        grid_spec=pltpu.PrefetchScalarGridSpec(
            num_scalar_prefetch=0,
            grid=(M // tm,),
            in_specs=[row_spec,
                      pl.BlockSpec((E, E), lambda i: (0, 0)),
                      row_spec, vec_spec, vec_spec],
            out_specs=row_spec,
        ),
        compiler_params=pltpu.CompilerParams(
            dimension_semantics=("parallel",)),
    )(ctx2d, wo, res2d, gamma.reshape(1, E), beta.reshape(1, E))


# ---------------------------------------------------------------------------
# Kernel 4: position-wise FFN (Linear->ReLU->Linear) + residual + LayerNorm,
# with the hidden dimension tiled and accumulated in a f32 VMEM scratch.
# ---------------------------------------------------------------------------
def _ffn_add_ln_kernel(x_ref, w1_ref, b1_ref, w2_ref, b2_ref, g_ref, be_ref,
                       o_ref, acc_ref, *, eps):
    k = pl.program_id(1)

    @pl.when(k == 0)
    def _():
        acc_ref[...] = jnp.zeros_like(acc_ref)

    # Partial first matmul over this hidden-dim chunk; bias+ReLU are elementwise
    # in H so they are applied per chunk before the second matmul accumulates.
    h = jnp.dot(x_ref[...], w1_ref[...], preferred_element_type=jnp.float32)
    h = jnp.maximum(h + b1_ref[...], 0.0)
    # (dropout after ReLU: identity in eval mode)
    acc_ref[...] += jnp.dot(h.astype(w2_ref.dtype), w2_ref[...],
                            preferred_element_type=jnp.float32)

    @pl.when(k == pl.num_programs(1) - 1)
    def _():
        # b2 + (dropout identity) + residual (same tile as the FFN input), LN.
        y = acc_ref[...] + b2_ref[...] + x_ref[...].astype(jnp.float32)
        mu = jnp.mean(y, axis=-1, keepdims=True)
        var = jnp.mean(jnp.square(y - mu), axis=-1, keepdims=True)
        yn = (y - mu) * jax.lax.rsqrt(var + eps)
        o_ref[...] = (yn * g_ref[...] + be_ref[...]).astype(o_ref.dtype)


def ffn_add_ln(x2d, w1, b1, w2, b2, gamma, beta, *, eps=_LN_EPS):
    M, E = x2d.shape
    H = w1.shape[1]
    tm = _pick_tile(M, (512, 256, 128, 64, 32, 16, 8))
    tH = _pick_tile(H, (512, 256, 128))

    itemsize = jnp.dtype(x2d.dtype).itemsize
    cost = pl.CostEstimate(
        flops=4 * M * E * H,                                    # two matmuls
        transcendentals=0,
        bytes_accessed=itemsize * (2 * M * E + 2 * E * H + H + 3 * E),
    )

    return pl.pallas_call(
        functools.partial(_ffn_add_ln_kernel, eps=eps),
        out_shape=jax.ShapeDtypeStruct((M, E), x2d.dtype),
        grid_spec=pltpu.PrefetchScalarGridSpec(
            num_scalar_prefetch=0,
            grid=(M // tm, H // tH),
            in_specs=[
                pl.BlockSpec((tm, E), lambda i, k: (i, 0)),     # x tile (also residual)
                pl.BlockSpec((E, tH), lambda i, k: (0, k)),     # W1 chunk
                pl.BlockSpec((1, tH), lambda i, k: (0, k)),     # b1 chunk
                pl.BlockSpec((tH, E), lambda i, k: (k, 0)),     # W2 chunk
                pl.BlockSpec((1, E), lambda i, k: (0, 0)),      # b2
                pl.BlockSpec((1, E), lambda i, k: (0, 0)),      # LN gamma
                pl.BlockSpec((1, E), lambda i, k: (0, 0)),      # LN beta
            ],
            out_specs=pl.BlockSpec((tm, E), lambda i, k: (i, 0)),
            scratch_shapes=[pltpu.VMEM((tm, E), jnp.float32)],
        ),
        compiler_params=pltpu.CompilerParams(
            dimension_semantics=("parallel", "arbitrary"),
            vmem_limit_bytes=64 * 1024 * 1024),
        cost_estimate=cost,
    )(x2d, w1, b1.reshape(1, H), w2, b2.reshape(1, E),
      gamma.reshape(1, E), beta.reshape(1, E))


# ---------------------------------------------------------------------------
# EncoderLayer forward (eval mode).
# ---------------------------------------------------------------------------
def encoder_layer(x, encoder_padding_mask, params, *, num_heads, eps=_LN_EPS):
    B, S, E = x.shape
    hd = E // num_heads
    M = B * S
    x2d = x.reshape(M, E)

    # ---- self-attention ----
    q2d, k2d, v2d = qkv_projection(x2d, params["wq"], params["wk"], params["wv"])

    def to_heads(t):  # (M,E) -> (B, nH, S, hd)   (layout plumbing only)
        return t.reshape(B, S, num_heads, hd).transpose(0, 2, 1, 3)

    mask_i32 = encoder_padding_mask.astype(jnp.int32).reshape(B, 1, S)
    ctx, attn_weights = mha_core(to_heads(q2d), to_heads(k2d), to_heads(v2d),
                                 mask_i32, scale=1.0 / math.sqrt(hd))
    ctx2d = ctx.transpose(0, 2, 1, 3).reshape(M, E)

    # output projection + dropout(identity) + residual + attn LayerNorm
    x1 = out_projection_add_ln(ctx2d, params["wo"], x2d,
                               params["ln_gamma"], params["ln_beta"], eps=eps)

    # FFN + residual + LayerNorm (reference reuses attn_layer_norm here).
    out2d = ffn_add_ln(x1, params["w1"], params["b1"], params["w2"], params["b2"],
                       params["ln_gamma"], params["ln_beta"], eps=eps)
    out = out2d.reshape(B, S, E)

    # NaN/inf clamp from the reference forward (no-op for finite outputs).
    clamp_value = jnp.finfo(out.dtype).max - 1000
    bad = jnp.any(jnp.isnan(out)) | jnp.any(jnp.isinf(out))
    out = jnp.where(bad, jnp.clip(out, -clamp_value, clamp_value), out)
    return out, attn_weights


# ---------------------------------------------------------------------------
# Parameter init (mimics nn.Linear / nn.LayerNorm-ish) and pure-JAX reference.
# ---------------------------------------------------------------------------
def init_params(key, emb_dim, ffn_dim, dtype=jnp.float32):
    ks = jax.random.split(key, 10)
    be = 1.0 / math.sqrt(emb_dim)
    bh = 1.0 / math.sqrt(ffn_dim)
    u = lambda k, shape, b: jax.random.uniform(k, shape, dtype, -b, b)
    return dict(
        wq=u(ks[0], (emb_dim, emb_dim), be),
        wk=u(ks[1], (emb_dim, emb_dim), be),
        wv=u(ks[2], (emb_dim, emb_dim), be),
        wo=u(ks[3], (emb_dim, emb_dim), be),
        w1=u(ks[4], (emb_dim, ffn_dim), be),
        b1=u(ks[5], (ffn_dim,), be),
        w2=u(ks[6], (ffn_dim, emb_dim), bh),
        b2=u(ks[7], (emb_dim,), bh),
        ln_gamma=(1.0 + 0.1 * jax.random.normal(ks[8], (emb_dim,), dtype)),
        ln_beta=(0.05 * jax.random.normal(ks[9], (emb_dim,), dtype)),
    )


def encoder_layer_ref(x, padding_mask, params, *, num_heads, eps=_LN_EPS):
    B, S, E = x.shape
    hd = E // num_heads

    def layer_norm(y):
        mu = jnp.mean(y, axis=-1, keepdims=True)
        var = jnp.mean(jnp.square(y - mu), axis=-1, keepdims=True)
        return (y - mu) / jnp.sqrt(var + eps) * params["ln_gamma"] + params["ln_beta"]

    q = x @ params["wq"]
    k = x @ params["wk"]
    v = x @ params["wv"]
    split = lambda t: t.reshape(B, S, num_heads, hd).transpose(0, 2, 1, 3)
    qh, kh, vh = split(q), split(k), split(v)
    s = jnp.einsum("bhqd,bhkd->bhqk", qh, kh) / math.sqrt(hd)
    s = jnp.where(padding_mask[:, None, None, :], -jnp.inf, s)
    w = jax.nn.softmax(s, axis=-1)
    ctx = jnp.einsum("bhqk,bhkd->bhqd", w, vh)
    ctx = ctx.transpose(0, 2, 1, 3).reshape(B, S, E)
    x1 = layer_norm(ctx @ params["wo"] + x)
    ffn = jnp.maximum(x1 @ params["w1"] + params["b1"], 0.0) @ params["w2"] + params["b2"]
    out = layer_norm(ffn + x1)
    return out, w


if __name__ == "__main__":
    batch, seq, emb_dim, num_heads, ffn_dim = 2, 8, 32, 4, 64

    key = jax.random.PRNGKey(0)
    kx, kp = jax.random.split(key)
    x = jax.random.normal(kx, (batch, seq, emb_dim), jnp.float32)
    params = init_params(kp, emb_dim, ffn_dim)

    # Padding mask: True = padded (ignored). Batch 1's last 2 positions padded.
    padding_mask = jnp.zeros((batch, seq), dtype=bool).at[1, -2:].set(True)

    out, attn_w = encoder_layer(x, padding_mask, params, num_heads=num_heads)
    out = jax.block_until_ready(out)
    attn_w = jax.block_until_ready(attn_w)

    ref_out, ref_w = encoder_layer_ref(x, padding_mask, params, num_heads=num_heads)
    assert out.shape == (batch, seq, emb_dim)
    assert attn_w.shape == (batch, num_heads, seq, seq)
    assert jnp.allclose(out, ref_out, atol=1e-4, rtol=1e-4), \
        float(jnp.max(jnp.abs(out - ref_out)))
    assert jnp.allclose(attn_w, ref_w, atol=1e-4, rtol=1e-4), \
        float(jnp.max(jnp.abs(attn_w - ref_w)))

    print("KERNEL_OK")
</pallas_src>

<mosaic_0001>
module attributes {stable_mosaic.version = 11 : i64} {
  func.func @_qkv_kernel(%arg0: i32, %arg1: memref<8x32xf32, #tpu.memory_space<vmem>>, %arg2: memref<32x32xf32, #tpu.memory_space<vmem>>, %arg3: memref<32x32xf32, #tpu.memory_space<vmem>>, %arg4: memref<32x32xf32, #tpu.memory_space<vmem>>, %arg5: memref<8x32xf32, #tpu.memory_space<vmem>>, %arg6: memref<8x32xf32, #tpu.memory_space<vmem>>, %arg7: memref<8x32xf32, #tpu.memory_space<vmem>>) attributes {dimension_semantics = [#tpu.dimension_semantics<parallel>], iteration_bounds = array<i64: 2>, scalar_prefetch = 0 : i64, scratch_operands = 0 : i64, tpu.core_type = #tpu.core_type<tc>, window_params = [{transform_indices = @transform_0, window_bounds = array<i64: 8, 32>}, {pipeline_mode = #tpu.pipeline_mode<synchronous>, transform_indices = @transform_1, window_bounds = array<i64: 32, 32>}, {pipeline_mode = #tpu.pipeline_mode<synchronous>, transform_indices = @transform_2, window_bounds = array<i64: 32, 32>}, {pipeline_mode = #tpu.pipeline_mode<synchronous>, transform_indices = @transform_3, window_bounds = array<i64: 32, 32>}, {transform_indices = @transform_4, window_bounds = array<i64: 8, 32>}, {transform_indices = @transform_5, window_bounds = array<i64: 8, 32>}, {transform_indices = @transform_6, window_bounds = array<i64: 8, 32>}]} {
    %c0 = arith.constant 0 : index
    %c0_0 = arith.constant 0 : index
    %0 = vector.load %arg1[%c0, %c0_0] : memref<8x32xf32, #tpu.memory_space<vmem>>, vector<8x32xf32>
    %c0_1 = arith.constant 0 : index
    %c0_2 = arith.constant 0 : index
    %1 = vector.load %arg2[%c0_1, %c0_2] : memref<32x32xf32, #tpu.memory_space<vmem>>, vector<32x32xf32>
    %cst = arith.constant dense<0.000000e+00> : vector<8x32xf32>
    %2 = tpu.matmul %0, %1, %cst {dimension_numbers = #tpu.dot_dimension_numbers<[1], [0], [0], [1], [0, 0, 1, 1], [], []>} : vector<8x32xf32>, vector<32x32xf32>, vector<8x32xf32> -> vector<8x32xf32>
    %c0_3 = arith.constant 0 : index
    %c0_4 = arith.constant 0 : index
    %3 = vector.load %arg5[%c0_3, %c0_4] : memref<8x32xf32, #tpu.memory_space<vmem>>, vector<8x32xf32>
    tpu.vector_store %arg5[%c0_3, %c0_4], %2 {strides = array<i32>} : memref<8x32xf32, #tpu.memory_space<vmem>>, vector<8x32xf32>,
    %c0_5 = arith.constant 0 : index
    %c0_6 = arith.constant 0 : index
    %4 = vector.load %arg3[%c0_5, %c0_6] : memref<32x32xf32, #tpu.memory_space<vmem>>, vector<32x32xf32>
    %cst_7 = arith.constant dense<0.000000e+00> : vector<8x32xf32>
    %5 = tpu.matmul %0, %4, %cst_7 {dimension_numbers = #tpu.dot_dimension_numbers<[1], [0], [0], [1], [0, 0, 1, 1], [], []>} : vector<8x32xf32>, vector<32x32xf32>, vector<8x32xf32> -> vector<8x32xf32>
    %c0_8 = arith.constant 0 : index
    %c0_9 = arith.constant 0 : index
    %6 = vector.load %arg6[%c0_8, %c0_9] : memref<8x32xf32, #tpu.memory_space<vmem>>, vector<8x32xf32>
    tpu.vector_store %arg6[%c0_8, %c0_9], %5 {strides = array<i32>} : memref<8x32xf32, #tpu.memory_space<vmem>>, vector<8x32xf32>,
    %c0_10 = arith.constant 0 : index
    %c0_11 = arith.constant 0 : index
    %7 = vector.load %arg4[%c0_10, %c0_11] : memref<32x32xf32, #tpu.memory_space<vmem>>, vector<32x32xf32>
    %cst_12 = arith.constant dense<0.000000e+00> : vector<8x32xf32>
    %8 = tpu.matmul %0, %7, %cst_12 {dimension_numbers = #tpu.dot_dimension_numbers<[1], [0], [0], [1], [0, 0, 1, 1], [], []>} : vector<8x32xf32>, vector<32x32xf32>, vector<8x32xf32> -> vector<8x32xf32>
    %c0_13 = arith.constant 0 : index
    %c0_14 = arith.constant 0 : index
    %9 = vector.load %arg7[%c0_13, %c0_14] : memref<8x32xf32, #tpu.memory_space<vmem>>, vector<8x32xf32>
    tpu.vector_store %arg7[%c0_13, %c0_14], %8 {strides = array<i32>} : memref<8x32xf32, #tpu.memory_space<vmem>>, vector<8x32xf32>,
    return
  }
  func.func @transform_0(%arg0: i32) -> (i32, i32) {
    %c0_i32 = arith.constant 0 : i32
    %c0_i32_0 = arith.constant 0 : i32
    return %arg0, %c0_i32 : i32, i32
  }
  func.func @transform_1(%arg0: i32) -> (i32, i32) {
    %c0_i32 = arith.constant 0 : i32
    %c0_i32_0 = arith.constant 0 : i32
    %c0_i32_1 = arith.constant 0 : i32
    return %c0_i32, %c0_i32_0 : i32, i32
  }
  func.func @transform_2(%arg0: i32) -> (i32, i32) {
    %c0_i32 = arith.constant 0 : i32
    %c0_i32_0 = arith.constant 0 : i32
    %c0_i32_1 = arith.constant 0 : i32
    return %c0_i32, %c0_i32_0 : i32, i32
  }
  func.func @transform_3(%arg0: i32) -> (i32, i32) {
    %c0_i32 = arith.constant 0 : i32
    %c0_i32_0 = arith.constant 0 : i32
    %c0_i32_1 = arith.constant 0 : i32
    return %c0_i32, %c0_i32_0 : i32, i32
  }
  func.func @transform_4(%arg0: i32) -> (i32, i32) {
    %c0_i32 = arith.constant 0 : i32
    %c0_i32_0 = arith.constant 0 : i32
    return %arg0, %c0_i32 : i32, i32
  }
  func.func @transform_5(%arg0: i32) -> (i32, i32) {
    %c0_i32 = arith.constant 0 : i32
    %c0_i32_0 = arith.constant 0 : i32
    return %arg0, %c0_i32 : i32, i32
  }
  func.func @transform_6(%arg0: i32) -> (i32, i32) {
    %c0_i32 = arith.constant 0 : i32
    %c0_i32_0 = arith.constant 0 : i32
    return %arg0, %c0_i32 : i32, i32
  }
}

</mosaic_0001>

<bundles_post_ra>
// kernel: tpu_custom_call.1
= control target key start
LH: loop header
LB: loop body
LE: loop exit
PB: predicated region body
PF: predicated region fallthrough
CT: control target
= control target key end

     0   :  { %s1276_s0 = inlined_call_operand.hbm [shape: f32[16,32], index: 0, kind: input, shape index: {}]   ;;  %s1277_s1 = inlined_call_operand.hbm [shape: f32[32,32], index: 1, kind: input, shape index: {}]   ;;  %s1278_s2 = inlined_call_operand.hbm [shape: f32[32,32], index: 2, kind: input, shape index: {}]   ;;  %s1279_s3 = inlined_call_operand.hbm [shape: f32[32,32], index: 3, kind: input, shape index: {}]   ;;  %s1280_s4 = inlined_call_operand.hbm [shape: f32[16,32], index: 4, kind: output, shape index: {0}]   ;;  %s1281_s5 = inlined_call_operand.hbm [shape: f32[16,32], index: 5, kind: output, shape index: {1}]   ;;  %s1282_s6 = inlined_call_operand.hbm [shape: f32[16,32], index: 6, kind: output, shape index: {2}]  }
   0x1   :  { %1288 = sst [smem:[#allocation21_spill]] %s1276_s0 }
   0x2   :  { %1289 = sst [smem:[#allocation22_spill]] %s1277_s1 }
   0x3   :  { %12 = vsyncpa [#allocation3], 0 }
   0x4   :  { %14 = vsyncpa [#allocation3 + $0x1], 0 }
   0x5   :  { %15 = vsyncpa [#allocation6], 0 }
   0x6   :  { %16 = vsyncpa [#allocation9], 0 }
   0x7   :  { %17 = vsyncpa [#allocation4], 0 }
   0x8   :  { %19 = vsyncpa [#allocation4 + $0x1], 0 }
   0x9   :  { %20 = vsyncpa [#allocation12], 0 }
   0xa   :  { %22 = vsyncpa [#allocation12 + $0x1], 0  ;;  %s1045_s21 = smov 0   ;;  %s1047_s22 = smov 0  }
   0xb   :  { %s1049_s23 = smov 0   ;;  %s1051_s24 = smov 0  }
   0xc LB: > { %s1290_s1 = sld [smem:[#allocation22_spill]]  ;;  %s1069_s28 = sadd.s32 4294967295, %s1003_s24   ;;  %s1003_s24 = sphi %s1051_s24, %s1311_s24   ;;  %s999_s23 = sphi %s1049_s23, %s1310_s23   ;;  %s995_s22 = sphi %s1047_s22, %s1309_s22   ;;  %s991_s21 = sphi %s1045_s21, %s1308_s21  }
   0xd   : > { %p634_p0 = scmp.ge.s32.totalorder %s1003_s24, 1  ;;  %p49_p1 = scmp.eq.s32.totalorder %s1069_s28, 0 }
   0xe   : > { %p200_p2 = scmp.lt.s32.totalorder %s1003_s24, 3  ;;  %s1005_s30 = smov [#allocation5]  }
   0xf   : > { %s213_s7 = sshll.u32 %s1005_s30, 4  ;;  %s225_s10 = sshll.u32 %s1278_s2, 4  ;;  %s214_s7 = int_to_ptr.vmem [resolvable:$true] %s213_s7  ;;  %s226_s10 = int_to_ptr.hbm [resolvable:$true] %s225_s10 }
  0x10   : > { %p1074_p3 = pnand %p634_p0, %p200_p2  ;;  %s239_s14 = sshll.u32 %s1279_s3, 4  ;;  %s240_s14 = int_to_ptr.hbm [resolvable:$true] %s239_s14 }
  0x11   : > { %s1006_s15 = smov [#allocation7]   ;;  %s1007_s17 = smov 128  }
  0x12   : > { %s211_s27 = sshll.u32 %s1290_s1, 4  ;;  %p680_p4 = pneg %p1074_p3  ;;  %s212_s27 = int_to_ptr.hbm [resolvable:$true] %s211_s27 }
  0x13   : > { %s227_s16 = sshll.u32 %s1006_s15, 4  ;;  %s1008_s18 = smov 8   ;;  %s228_s16 = int_to_ptr.vmem [resolvable:$true] %s227_s16 }
  0x14   : > { %p1086_p6 = pnand %p680_p4, %p49_p1  ;;  %s1009_s19 = smov [#allocation8]  }
  0x15   : > { %s241_s20 = sshll.u32 %s1009_s19, 4  ;;  %s1283_s25 = sadd.s32 4294967294, %s1003_s24   ;;  %s242_s20 = int_to_ptr.vmem [resolvable:$true] %s241_s20 }
  0x16   : > { %683 = dma.hbm_to_vmem [thread:$0]  (!%p1086_p6), %s212_s27, 512, %s214_s7, [#allocation6], %s1007_s17, %s1007_s17, %s1008_s18  }
  0x17   : > { %686 = dma.hbm_to_vmem [thread:$0]  (!%p1086_p6), %s226_s10, 512, %s228_s16, [#allocation6], %s1007_s17, %s1007_s17, %s1008_s18  }
  0x18   : > { %689 = dma.hbm_to_vmem [thread:$0]  (!%p1086_p6), %s240_s14, 512, %s242_s20, [#allocation9], %s1007_s17, %s1007_s17, %s1008_s18  }
  0x19   : > { %s1101_s26 = sadd.s32 1, %s1003_s24   ;;  %s35_s27 = sadd.s32 1, %s999_s23 }
  0x1a   : > { %s32_s30 = ssub.s32 %s1003_s24, %s1101_s26  ;;  %p42_p7 = scmp.ne.s32.totalorder %s999_s23, %s995_s22 }
  0x1b   : > { %p33_p8 = scmp.eq.s32.totalorder %s32_s30, 0  ;;  %p43_p9 = scmp.eq.s32.totalorder %s1003_s24, 0 }
  0x1c   : > { %p48_p10 = scmp.ne.s32.totalorder %s995_s22, %s991_s21  ;;  %p135_p11 = scmp.eq.s32.totalorder %s1069_s28, 1 }
  0x1d   : > { %s1113_s7 = scalar_select %p33_p8, %s999_s23, %s35_s27  }
  0x1e   : > { %p1117_p12 = por %p49_p1, %p48_p10  ;;  %p1121_p13 = por %p135_p11, %p42_p7 }
  0x1f   : > { %p141_p0 = scmp.eq.s32.totalorder %s1283_s25, 1  ;;  %p44_p2 = por %p43_p9, %p42_p7 }
  0x20   : > { %s255_s10 = sand.u32 1, %s999_s23   ;;  %p707_p6 = scmp.lt.s32.totalorder %s1003_s24, 2 }
  0x21   : > { %p1128_p4 = por %p141_p0, %p48_p10  ;;  %s639_s12 = sshll.u32 %s255_s10, 3 }
  0x22   : > { %s640_s13 = sshll.u32 %s1003_s24, 3  ;;  %s1296_s0 = sld [smem:[#allocation21_spill]] }
  0x23   : > { %s259_s18 = scalar_lea.vmem [#allocation2], %s639_s12  ;;  %p1137_p8 = pnand %p707_p6, %p44_p2 }
  0x24   : > { %s267_s19 = sshll.u32 %s259_s18, 4  ;;  %s256_s27 = scalar_lea.sflag [#allocation3], %s255_s10  ;;  %s268_s19 = int_to_ptr.vmem [resolvable:$true] %s267_s19 }
  0x25   : > { %p843_p9 = pneg %p1137_p8 }
  0x28   : > { %s263_s16 = scalar_lea.hbm %s1296_s0, %s640_s13  ;;  %s846_s12 = scalar_lea.hbm %s1296_s0, 16 }
  0x29   : > { %s265_s17 = sshll.u32 %s263_s16, 4  ;;  %s266_s17 = int_to_ptr.hbm [resolvable:$true] %s265_s17 }
  0x2a   : > { %s839_s30 = sshra.s32 %s266_s17, 4  ;;  %s840_s30 = int_to_ptr.hbm [resolvable:$true] %s839_s30 }
  0x2b   : > { %s841_s25 = scalar_lea.hbm %s840_s30, 8  ;;  %p847_p0 = scmp.lt.s32.totalorder %s840_s30, %s1296_s0 }
  0x2c   : > { %p842_p7 = scmp.ne.s32.totalorder %s840_s30, %s841_s25  ;;  %p848_p2 = scmp.lt.s32.totalorder %s846_s12, %s841_s25 }
  0x2e   : > { %p844_p10 = pnand %p843_p9, %p842_p7  ;;  %p849_p6 = por %p848_p2, %p847_p0 }
  0x30   : > { %p845_p11 = pneg %p844_p10 }
  0x32   : > { %p850_p5 = pnand %p849_p6, %p845_p11 }
  0x34   : > { %853 = shalt.err (!%p850_p5)
}
  0x35   : > { %693 = dma.hbm_to_vmem [thread:$0]  (!%p1137_p8), %s266_s17, 128, %s268_s19, %s256_s27  }
  0x36   : > { %276 = sbr.rel (%p1074_p3) target bundleno = 237 (0xed), region = 36 }
  0x3b   : > { %s1154_s10 = sand.u32 1, %s995_s22  }
  0x3c   : > { %s1157_s18 = sshll.u32 %s1154_s10, 3  ;;  %s279_s30 = scalar_lea.sflag [#allocation3], %s1154_s10 }
  0x3d   : > { %s282_s25 = scalar_lea.vmem [#allocation2], %s1157_s18 }
  0x3e   : > { %970 = dma.done.wait (%p1117_p12), %s279_s30, 128  }
  0x3f   : > { %972 = vsyncadd (%p1117_p12), %s279_s30, 4294967168 }
  0x40   : > { %974 = dma.done.wait (%p49_p1), [#allocation6], 1024  }
  0x41   : > { %976 = vsyncadd (%p49_p1), [#allocation6], 4294966272 }
  0x42   : > { %978 = dma.done.wait (%p49_p1), [#allocation9], 512  }
  0x43   : > { %980 = vsyncadd (%p49_p1), [#allocation9], 4294966784  ;;  %v395_v0 = vld [vmem:[#allocation8 + $0x18] sm:$0xff]  ;;  %v394_v1 = vld [vmem:[#allocation8 + $0x10] sm:$0xff]  ;;  %vm342_vm0 = vcmask 261120   ;;  %s655_s29 = sshll.u32 %s1069_s28, 3 }
  0x44   : > { %408 = vmatpush.msra.mxu2 %v395_v0  ;;  %v370_v2 = vld [vmem:[#allocation7 + $0x18] sm:$0xff]  ;;  %v393_v4 = vld [vmem:[#allocation8 + $0x8] sm:$0xff]  ;;  %v369_v5 = vld [vmem:[#allocation7 + $0x10] sm:$0xff]  ;;  %s422_s8 = sand.u32 1, %s1069_s28   ;;  %s452_s20 = scalar_lea.hbm %s1281_s5, %s655_s29 }
  0x45   : > { %v341_v3 = vld [vmem:[#allocation5 + $0x18] sm:$0xff]  ;;  %383 = vmatpush.msra.mxu1 %v370_v2  ;;  %v340_v6 = vld [vmem:[#allocation5 + $0x10] sm:$0xff]  ;;  %v368_v7 = vld [vmem:[#allocation7 + $0x8] sm:$0xff]  ;;  %s438_s14 = scalar_lea.hbm %s1280_s4, %s655_s29  ;;  %s329_s12 = scalar_lea.vmem [#allocation11], %s1157_s18 }
  0x46   : > { %358 = vmatpush.msra.mxu0 %v341_v3  ;;  %409 = vmatpush.msra.mxu2 %v394_v1  ;;  %v339_v8 = vld [vmem:[#allocation5 + $0x8] sm:$0xff]  ;;  %v392_v9 = vld [vmem:[#allocation8] sm:$0xff]  ;;  %v337_v10 = vld [vmem:[%s282_s25] sm:$0xff]  ;;  %s1185_s15 = sshll.u32 %s329_s12, 4  ;;  %s1187_s16 = sshll.u32 %s452_s20, 4  ;;  %s455_s15 = int_to_ptr.vmem [resolvable:$true] %s1185_s15  ;;  %s457_s16 = int_to_ptr.hbm [resolvable:$true] %s1187_s16 }
  0x47   : > { %384 = vmatpush.msra.mxu1 %v369_v5  ;;  %v367_v11 = vld [vmem:[#allocation7] sm:$0xff]  ;;  %s322_s30 = scalar_lea.vmem [#allocation10], %s1157_s18  ;;  %s1192_s28 = sshll.u32 %s438_s14, 4 }
  0x48   : > { %359 = vmatpush.msra.mxu0 %v340_v6  ;;  %410 = vmatpush.msra.mxu2 %v393_v4  ;;  %v338_v12 = vld [vmem:[#allocation5] sm:$0xff]  ;;  %s1190_s25 = sshll.u32 %s322_s30, 4  ;;  %1299 = sst [smem:[#allocation20_spill]] %s1192_s28 }
  0x49   : > { %385 = vmatpush.msra.mxu1 %v368_v7  ;;  %1298 = sst [smem:[#allocation19_spill]] %s1190_s25  ;;  %s466_s27 = scalar_lea.hbm %s1282_s6, %s655_s29 }
  0x4a   : > { %360 = vmatpush.msra.mxu0 %v339_v8  ;;  %411 = vmatpush.msra.mxu2 %v392_v9  ;;  %s1287_s20 = scalar_lea.vmem [#allocation13], %s1157_s18  ;;  %s1207_s14 = sshll.u32 %s466_s27, 4  ;;  %s471_s14 = int_to_ptr.hbm [resolvable:$true] %s1207_s14 }
  0x4b   : > { %651 = vmatmul.msk.f32.vlgmr.msra.gmra.mxu2 %vm342_vm0, %v337_v10  ;;  %386 = vmatpush.msra.mxu1 %v367_v11  ;;  %s1205_s13 = sshll.u32 %s1287_s20, 4  ;;  %s1210_s0 = scalar_lea.sflag [#allocation12], %s422_s8  ;;  %s469_s13 = int_to_ptr.vmem [resolvable:$true] %s1205_s13 }
  0x4c   : > { %361 = vmatpush.msra.mxu0 %v338_v12  ;;  %650 = vmatmul.msk.f32.vlgmr.msra.gmra.mxu1 %vm342_vm0, %v337_v10  ;;  %s883_s17 = sshra.s32 %s457_s16, 4  ;;  %s889_s25 = scalar_lea.hbm %s1281_s5, 16  ;;  %s884_s17 = int_to_ptr.hbm [resolvable:$true] %s883_s17 }
  0x4d   : > { %649 = vmatmul.msk.f32.vlgmr.msra.gmra.mxu0 %vm342_vm0, %v337_v10  ;;  %s885_s29 = scalar_lea.hbm %s884_s17, 8  ;;  %p890_p12 = scmp.lt.s32.totalorder %s884_s17, %s1281_s5 }
  0x4e   : > { %p886_p1 = scmp.ne.s32.totalorder %s884_s17, %s885_s29  ;;  %p891_p8 = scmp.lt.s32.totalorder %s889_s25, %s885_s29 }
  0x50   : > { %p887_p3 = pnand %p886_p1, %p1121_p13  ;;  %p892_p7 = por %p891_p8, %p890_p12 }
  0x52   : > { %p888_p5 = pneg %p887_p3 }
  0x54   : > { %p893_p9 = pnand %p892_p7, %p888_p5 }
  0xc9   : > { %v388_v13 = vpop.f32.mrf.mxu1 }
  0xca   : > { %391 = vst.msk [vmem:[%s329_s12] sm:$0xff] %vm342_vm0, %v388_v13  ;;  %v363_v14 = vpop.f32.mrf.mxu0 }
  0xcb   : > { %366 = vst.msk [vmem:[%s322_s30] sm:$0xff] %vm342_vm0, %v363_v14 }
  0xcc   : > { %896 = shalt.err (!%p893_p9)
}
  0xcd   : > { %s1300_s8 = sld [smem:[#allocation20_spill]]  ;;  %s418_s30 = scalar_lea.sflag [#allocation4], %s1154_s10 }
  0xce   : > { %675 = dma.vmem_to_hbm [thread:$0]  (%p1121_p13), %s455_s15, 128, %s457_s16, %s1210_s0  }
  0xcf   : > { %s917_s20 = scalar_lea.hbm %s1280_s4, 16 }
  0xd3   : > { %s1301_s27 = int_to_ptr.hbm [resolvable:$true] %s1300_s8 }
  0xd4   : > { %s911_s1 = sshra.s32 %s1301_s27, 4  ;;  %s912_s1 = int_to_ptr.hbm [resolvable:$true] %s911_s1 }
  0xd5   : > { %s913_s19 = scalar_lea.hbm %s912_s1, 8  ;;  %p918_p2 = scmp.lt.s32.totalorder %s912_s1, %s1280_s4 }
  0xd6   : > { %p914_p10 = scmp.ne.s32.totalorder %s912_s1, %s913_s19  ;;  %p919_p6 = scmp.lt.s32.totalorder %s917_s20, %s913_s19 }
  0xd8   : > { %p915_p11 = pnand %p914_p10, %p1121_p13  ;;  %p920_p1 = por %p919_p6, %p918_p2 }
  0xda   : > { %p916_p0 = pneg %p915_p11 }
  0xdc   : > { %p921_p3 = pnand %p920_p1, %p916_p0 }
  0xde   : > { %924 = shalt.err (!%p921_p3)
}
  0xdf   : > { %s1302_s10 = smov %s1301_s27  ;;  %s1303_s15 = sld [smem:[#allocation19_spill]]  ;;  %v413_v15 = vpop.f32.mrf.mxu2 }
  0xe0   : > { %s1305_s1 = scalar_lea.vmem [#allocation13], %s1157_s18  ;;  %s939_s12 = sshra.s32 %s471_s14, 4  ;;  %s940_s12 = int_to_ptr.hbm [resolvable:$true] %s939_s12 }
  0xe1   : > { %416 = vst.msk [vmem:[%s1305_s1] sm:$0xff] %vm342_vm0, %v413_v15  ;;  %s941_s27 = scalar_lea.hbm %s940_s12, 8  ;;  %s945_s25 = scalar_lea.hbm %s1282_s6, 16 }
  0xe2   : > { %p942_p5 = scmp.ne.s32.totalorder %s940_s12, %s941_s27  ;;  %p946_p7 = scmp.lt.s32.totalorder %s940_s12, %s1282_s6 }
  0xe3   : > { %p947_p9 = scmp.lt.s32.totalorder %s945_s25, %s941_s27 }
  0xe4   : > { %p943_p12 = pnand %p942_p5, %p1121_p13 }
  0xe5   : > { %s1304_s16 = int_to_ptr.vmem [resolvable:$true] %s1303_s15  ;;  %p948_p10 = por %p947_p9, %p946_p7 }
  0xe6   : > { %674 = dma.vmem_to_hbm [thread:$0]  (%p1121_p13), %s1304_s16, 128, %s1302_s10, %s418_s30  }
  0xe7   : > { %p944_p8 = pneg %p943_p12 }
  0xe9   : > { %p949_p11 = pnand %p948_p10, %p944_p8 }
  0xeb   : > { %952 = shalt.err (!%p949_p11)
}
  0xec   : > { %676 = dma.vmem_to_hbm [thread:$0]  (%p1121_p13), %s469_s13, 128, %s471_s14, %s1210_s0  }
  0xed PF: > { %s482_s18 = sand.u32 1, %s991_s21   ;;  %p1306_p0 = scmp.ge.s32.totalorder %s1003_s24, 2 }
  0xee   : > { %s483_s30 = scalar_lea.sflag [#allocation4], %s482_s18 }
  0xef   : > { %p695_p2 = pnand %p1306_p0, %p1128_p4 }
  0xf1   : > { %p696_p6 = pneg %p695_p2 }
  0xf3   : > { %982 = dma.done.wait (%p696_p6), %s483_s30, 128  }
  0xf4   : > { %984 = vsyncadd (%p696_p6), %s483_s30, 4294967168  ;;  %s1307_s17 = sadd.s32 4294967294, %s1003_s24  }
  0xf5   : > { %s492_s29 = sand.u32 1, %s1307_s17  }
  0xf6   : > { %s493_s10 = scalar_lea.sflag [#allocation12], %s492_s29 }
  0xf7   : > { %986 = dma.done.wait (%p696_p6), %s493_s10, 256  }
  0xf8   : > { %988 = vsyncadd (%p696_p6), %s493_s10, 4294967040  ;;  %p25_p13 = scmp.ge.s32.totalorder %s1101_s26, 4   ;;  %s1308_s21 = smov %s995_s22 }
  0xf9   : > { %s1309_s22 = smov %s999_s23  ;;  %s1310_s23 = smov %s1113_s7 }
  0xfa   : > { %s1311_s24 = smov %s1101_s26  ;;  %27 = sbr.rel (!%p25_p13) target bundleno = 12 (0xc), region = 125 }
  0xff   :  { %509 = vsyncpa [#allocation3], 1 }
 0x100   :  { %511 = vsyncpa [#allocation3 + $0x1], 1 }
 0x101   :  { %512 = vsyncpa [#allocation6], 1 }
 0x102   :  { %513 = vsyncpa [#allocation9], 1 }
 0x103   :  { %514 = vsyncpa [#allocation4], 1 }
 0x104   :  { %516 = vsyncpa [#allocation4 + $0x1], 1 }
 0x105   :  { %517 = vsyncpa [#allocation12], 1 }
 0x106   :  { %519 = vsyncpa [#allocation12 + $0x1], 1 }

</bundles_post_ra>
